<compile_context>
chip_gen: v5e
topology: v5e:2x2
jax: 0.10.0
libtpu: 0.0.40
codegen_flags: <defaults>
</compile_context>

<pallas_src>
import functools

import jax
import jax.numpy as jnp
from jax import lax
from jax.experimental import pallas as pl
from jax.experimental.pallas import tpu as pltpu


_EPS_SQ = 1e-24  # (1e-12)**2 -> rsqrt(max(ss, eps^2)) == 1/max(||x||, 1e-12)
_LANE = 128


def _round_up(x, m):
    return ((x + m - 1) // m) * m


def _row_tile(m, max_rows):
    """Row-tile size: big tiles, but always >=2 grid steps when possible so the
    two v7x TensorCores both get work; keeps the sublane (x8) alignment."""
    if m > max_rows:
        return max_rows
    if m >= 16 and m % 16 == 0:
        return m // 2
    return m


def _const_spec(block_shape, index_map):
    """BlockSpec for a constant-index block (weights / biases): request a single
    VMEM buffer (double-buffering a block whose index never changes is waste).
    Falls back to a plain BlockSpec if pipeline_mode/Buffered is unavailable."""
    buffered = getattr(pl, "Buffered", None)
    if buffered is not None:
        try:
            return pl.BlockSpec(block_shape, index_map, pipeline_mode=buffered(1))
        except Exception:  # older jax without pipeline_mode kwarg
            pass
    return pl.BlockSpec(block_shape, index_map)


# --------------------- row-flattened linear (input_proj / semantic) ---------------------


def _linear_kernel(x_ref, w_ref, b_ref, o_ref, *, compute_dtype):
    x = x_ref[...]
    w = w_ref[...]
    if compute_dtype is not None:
        x = x.astype(compute_dtype)
        w = w.astype(compute_dtype)
    y = jnp.dot(x, w, preferred_element_type=jnp.float32) + b_ref[...]
    o_ref[...] = y.astype(o_ref.dtype)


def linear_rows_pallas(x, w, b, *, max_rows=512, compute_dtype=None):
    """x[..., K] @ w[K, N] + b[N]; leading dims row-flattened and row-tiled."""
    *lead, K = x.shape
    N = w.shape[1]
    M = 1
    for d in lead:
        M *= d
    tile = _row_tile(M, max_rows)
    const = lambda i: (0, 0)
    out = pl.pallas_call(
        functools.partial(_linear_kernel, compute_dtype=compute_dtype),
        out_shape=jax.ShapeDtypeStruct((M, N), x.dtype),
        grid_spec=pltpu.PrefetchScalarGridSpec(
            num_scalar_prefetch=0,
            grid=(pl.cdiv(M, tile),),
            in_specs=[
                pl.BlockSpec((tile, K), lambda i: (i, 0)),
                _const_spec((K, N), const),
                _const_spec((1, N), const),
            ],
            out_specs=pl.BlockSpec((tile, N), lambda i: (i, 0)),
        ),
        compiler_params=pltpu.CompilerParams(dimension_semantics=("parallel",)),
    )(x.reshape(M, K), w, b.reshape(1, N))
    return out.reshape(*lead, N)


# --------------------- fused DETR heads: class_embed + bbox_embed(MLP)+sigmoid ----------


def _det_heads_kernel(x_ref, wcat, bcat, w2, b2, w3, b3, out_ref, *, ncls):
    x = x_ref[...]
    # shared-activation concat matmul: x @ [class_w | bbox_w1]
    y1 = jnp.dot(x, wcat[...], preferred_element_type=jnp.float32) + bcat[...]
    cls = y1[:, :ncls]
    h = jnp.maximum(y1[:, ncls:], 0.0)
    h = jnp.maximum(jnp.dot(h, w2[...], preferred_element_type=jnp.float32) + b2[...], 0.0)
    box = jax.nn.sigmoid(jnp.dot(h, w3[...], preferred_element_type=jnp.float32) + b3[...])
    slab = jnp.concatenate([cls, box], axis=-1)
    pad = out_ref.shape[-1] - slab.shape[-1]
    if pad:
        slab = jnp.concatenate(
            [slab, jnp.zeros((slab.shape[0], pad), slab.dtype)], axis=-1)
    out_ref[...] = slab.astype(out_ref.dtype)     # single lane-dense store


def det_heads_pallas(hs, class_w, class_b, bbox_p, *, max_rows=512):
    L, B, Q, K = hs.shape
    Ncls = class_w.shape[1]
    H1 = bbox_p["w1"].shape[1]
    H2 = bbox_p["w2"].shape[1]
    Nbox = bbox_p["w3"].shape[1]
    # pre-concat same-activation weights (one MXU push for class + bbox layer-1)
    wcat = jnp.concatenate([class_w, bbox_p["w1"]], axis=1)
    bcat = jnp.concatenate([class_b, bbox_p["b1"]]).reshape(1, Ncls + H1)
    W_out = _round_up(Ncls + Nbox, _LANE)          # lane-dense single output slab
    M = L * B * Q
    tile = _row_tile(M, max_rows)
    rows = lambda i: (i, 0)
    const = lambda i: (0, 0)
    out = pl.pallas_call(
        functools.partial(_det_heads_kernel, ncls=Ncls),
        out_shape=jax.ShapeDtypeStruct((M, W_out), hs.dtype),
        grid_spec=pltpu.PrefetchScalarGridSpec(
            num_scalar_prefetch=0,
            grid=(pl.cdiv(M, tile),),
            in_specs=[
                pl.BlockSpec((tile, K), rows),
                _const_spec((K, Ncls + H1), const),
                _const_spec((1, Ncls + H1), const),
                _const_spec((H1, H2), const), _const_spec((1, H2), const),
                _const_spec((H2, Nbox), const), _const_spec((1, Nbox), const),
            ],
            out_specs=pl.BlockSpec((tile, W_out), rows),
        ),
        compiler_params=pltpu.CompilerParams(dimension_semantics=("parallel",)),
    )(hs.reshape(M, K), wcat, bcat,
      bbox_p["w2"], bbox_p["b2"].reshape(1, H2),
      bbox_p["w3"], bbox_p["b3"].reshape(1, Nbox))
    cls = out[:, :Ncls].reshape(L, B, Q, Ncls)
    box = out[:, Ncls:Ncls + Nbox].reshape(L, B, Q, Nbox)
    return cls, box


# ---------- fused HOI heads: H_Pointer MLP+L2, O_Pointer MLP+L2, action_embed -----------


def _hoi_heads_kernel(x_ref, wcat1, bcat1,
                      hw2, hb2, hw3, hb3,
                      ow2, ob2, ow3, ob3,
                      out_ref, *, h1):
    x = x_ref[...]
    # shared-activation concat matmul: x @ [h_w1 | o_w1 | act_w]
    y1 = jnp.dot(x, wcat1[...], preferred_element_type=jnp.float32) + bcat1[...]
    hh = jnp.maximum(y1[:, :h1], 0.0)
    oh = jnp.maximum(y1[:, h1:2 * h1], 0.0)
    act = y1[:, 2 * h1:]

    def tail(h, w2, b2, w3, b3):
        h = jnp.maximum(jnp.dot(h, w2[...], preferred_element_type=jnp.float32) + b2[...], 0.0)
        y = jnp.dot(h, w3[...], preferred_element_type=jnp.float32) + b3[...]
        ss = jnp.sum(y * y, axis=-1, keepdims=True)
        return y * jax.lax.rsqrt(jnp.maximum(ss, _EPS_SQ))   # F.normalize(p=2, eps=1e-12)

    hp = tail(hh, hw2, hb2, hw3, hb3)
    op = tail(oh, ow2, ob2, ow3, ob3)
    slab = jnp.concatenate([hp, op, act], axis=-1)
    pad = out_ref.shape[-1] - slab.shape[-1]
    if pad:
        slab = jnp.concatenate(
            [slab, jnp.zeros((slab.shape[0], pad), slab.dtype)], axis=-1)
    out_ref[...] = slab.astype(out_ref.dtype)     # single lane-dense store


def hoi_heads_pallas(ihs, h_p, o_p, act_w, act_b, *, max_rows=512):
    L, B, Q, K = ihs.shape
    H1 = h_p["w1"].shape[1]
    H2 = h_p["w2"].shape[1]
    Hd = h_p["w3"].shape[1]
    Nact = act_w.shape[1]
    wcat1 = jnp.concatenate([h_p["w1"], o_p["w1"], act_w], axis=1)
    bcat1 = jnp.concatenate([h_p["b1"], o_p["b1"], act_b]).reshape(1, 2 * H1 + Nact)
    W_out = _round_up(2 * Hd + Nact, _LANE)
    M = L * B * Q
    tile = _row_tile(M, max_rows)
    rows = lambda i: (i, 0)
    const = lambda i: (0, 0)
    out = pl.pallas_call(
        functools.partial(_hoi_heads_kernel, h1=H1),
        out_shape=jax.ShapeDtypeStruct((M, W_out), ihs.dtype),
        grid_spec=pltpu.PrefetchScalarGridSpec(
            num_scalar_prefetch=0,
            grid=(pl.cdiv(M, tile),),
            in_specs=[
                pl.BlockSpec((tile, K), rows),
                _const_spec((K, 2 * H1 + Nact), const),
                _const_spec((1, 2 * H1 + Nact), const),
                _const_spec((H1, H2), const), _const_spec((1, H2), const),
                _const_spec((H2, Hd), const), _const_spec((1, Hd), const),
                _const_spec((H1, H2), const), _const_spec((1, H2), const),
                _const_spec((H2, Hd), const), _const_spec((1, Hd), const),
            ],
            out_specs=pl.BlockSpec((tile, W_out), rows),
        ),
        compiler_params=pltpu.CompilerParams(dimension_semantics=("parallel",)),
    )(ihs.reshape(M, K), wcat1, bcat1,
      h_p["w2"], h_p["b2"].reshape(1, H2),
      h_p["w3"], h_p["b3"].reshape(1, Hd),
      o_p["w2"], o_p["b2"].reshape(1, H2),
      o_p["w3"], o_p["b3"].reshape(1, Hd))
    hp = out[:, :Hd].reshape(L, B, Q, Hd)
    op = out[:, Hd:2 * Hd].reshape(L, B, Q, Hd)
    act = out[:, 2 * Hd:2 * Hd + Nact].reshape(L, B, Q, Nact)
    return hp, op, act


# ------------- fused pointer scores: normalize+sum hs[-n:] and H/O matmuls --------------


def _flatten_lq(x):
    """(L, Q, D) -> (L*Q, D) at value level (reshape when sublane-aligned)."""
    Lr, Qr, Dr = x.shape
    if Qr % 8 == 0:
        return x.reshape(Lr * Qr, Dr)
    return jnp.concatenate([x[l] for l in range(Lr)], axis=0)


def _pointer_kernel(hs_ref, hp_ref, op_ref, hidx_ref, oidx_ref, *, scale):
    # normalize each of the last-n DETR layers and sum (f32 accumulation)
    hs = hs_ref[...].astype(jnp.float32)               # (n, Nq_pad, Hd)
    ss = jnp.sum(hs * hs, axis=-1, keepdims=True)
    hs_sum = jnp.sum(hs * jax.lax.rsqrt(jnp.maximum(ss, _EPS_SQ)), axis=0)  # (Nq_pad, Hd)

    hp = _flatten_lq(hp_ref[...]).astype(jnp.float32)   # (L*Qh, Hd)
    op = _flatten_lq(op_ref[...]).astype(jnp.float32)
    dn = (((1,), (1,)), ((), ()))                       # contract last dims: A @ B^T
    hidx_ref[...] = (lax.dot_general(hp, hs_sum, dn, preferred_element_type=jnp.float32)
                     * scale).astype(hidx_ref.dtype)
    oidx_ref[...] = (lax.dot_general(op, hs_sum, dn, preferred_element_type=jnp.float32)
                     * scale).astype(oidx_ref.dtype)


def pointer_scores_pallas(hs, h_ptr, o_ptr, tau, n_layers):
    """hs: [L_det, B, Nq, Hd]; h_ptr/o_ptr: [L_int, B, Qh, Hd]
       -> hidx, oidx: [B, L_int, Qh, Nq]
    Reference HOTR averages bmm(P, norm(hs[-i]).T)/tau over the last n layers;
    by linearity this equals P @ (sum_i norm(hs[-i])).T * 1/(tau*n), computed in
    ONE kernel per batch with L flattened into matmul rows and Nq lane-padded."""
    Ld, B, Nq, Hd = hs.shape
    Li, _, Qh, _ = h_ptr.shape
    n = min(n_layers, Ld)
    Nq_pad = _round_up(Nq, _LANE)                       # lane-dense scores + MXU N fill
    hs_last = hs[Ld - n:]                               # last-n decoder layers
    if Nq_pad != Nq:
        hs_last = jnp.pad(hs_last, ((0, 0), (0, 0), (0, Nq_pad - Nq), (0, 0)))
    scale = 1.0 / (float(tau) * float(n))               # /tau per layer and /n, folded once
    hidx, oidx = pl.pallas_call(
        functools.partial(_pointer_kernel, scale=scale),
        out_shape=(jax.ShapeDtypeStruct((B, Li * Qh, Nq_pad), h_ptr.dtype),
                   jax.ShapeDtypeStruct((B, Li * Qh, Nq_pad), h_ptr.dtype)),
        grid_spec=pltpu.PrefetchScalarGridSpec(
            num_scalar_prefetch=0,
            grid=(B,),
            in_specs=[
                pl.BlockSpec((n, None, Nq_pad, Hd), lambda b: (0, b, 0, 0)),
                pl.BlockSpec((Li, None, Qh, Hd), lambda b: (0, b, 0, 0)),
                pl.BlockSpec((Li, None, Qh, Hd), lambda b: (0, b, 0, 0)),
            ],
            out_specs=[pl.BlockSpec((None, Li * Qh, Nq_pad), lambda b: (b, 0, 0)),
                       pl.BlockSpec((None, Li * Qh, Nq_pad), lambda b: (b, 0, 0))],
        ),
        compiler_params=pltpu.CompilerParams(dimension_semantics=("parallel",)),
    )(hs_last, h_ptr, o_ptr)
    hidx = hidx.reshape(B, Li, Qh, Nq_pad)[..., :Nq]
    oidx = oidx.reshape(B, Li, Qh, Nq_pad)[..., :Nq]
    return hidx, oidx


# --------------------------------- HOTR forward ---------------------------------


def hotr_forward(params, c5_nhwc, semantic_features, hs, interaction_hs, tau,
                 hoi_aux_loss=True, matmul_dtype=None):
    # layout: c5 is NHWC; input_proj (1x1 Conv2d) == channel matmul over flattened rows.
    B, Hs, Ws, Cin = c5_nhwc.shape
    src = linear_rows_pallas(c5_nhwc.reshape(B, Hs * Ws, Cin),
                             params["input_proj_w"], params["input_proj_b"],
                             compute_dtype=matmul_dtype)

    # semantic_features -> Linear(300, 256) -> permute(1, 0, 2)
    sem = linear_rows_pallas(semantic_features, params["sem_w"], params["sem_b"],
                             compute_dtype=matmul_dtype)
    sem = jnp.transpose(sem, (1, 0, 2))

    # TODO(synk): detr.backbone, detr.transformer and interaction_transformer are
    # external black-box sub-modules (and semantic .npy loading is file I/O);
    # their decoder outputs `hs` / `interaction_hs` are taken as inputs here.

    # Fused DETR heads: class logits + bbox MLP + sigmoid, one launch, one slab.
    outputs_class, outputs_coord = det_heads_pallas(
        hs, params["class_w"], params["class_b"], params["bbox"])

    # Fused HOI heads: H/O pointer MLP + L2-norm + action logits, one launch, one slab.
    H_Pointer_reprs, O_Pointer_reprs, outputs_action = hoi_heads_pallas(
        interaction_hs, params["h_ptr"], params["o_ptr"],
        params["act_w"], params["act_b"])

    # Fused norm-sum + pointer scores: [B, L_int, Qh, Nq] (layer axis on dim 1).
    n = 3
    outputs_hidx, outputs_oidx = pointer_scores_pallas(
        hs, H_Pointer_reprs, O_Pointer_reprs, tau, n)

    L_int = interaction_hs.shape[0]
    out = {
        "pred_logits": outputs_class[-1],
        "pred_boxes": outputs_coord[-1],
        "pred_hidx": outputs_hidx[:, -1],
        "pred_oidx": outputs_oidx[:, -1],
        "pred_actions": outputs_action[-1],
        "hoi_recognition_time": 0.0,  # TODO(synk): wall-clock timing not meaningful here
        "_input_proj": src,
        "_semantic_features": sem,
    }
    if hoi_aux_loss:
        out["hoi_aux_outputs"] = [
            {
                "pred_logits": outputs_class[-1],
                "pred_boxes": outputs_coord[-1],
                "pred_hidx": outputs_hidx[:, i],
                "pred_oidx": outputs_oidx[:, i],
                "pred_actions": outputs_action[i],
            }
            for i in range(L_int - 1)
        ]
    return out


# ------------------------------- parameter init -------------------------------


def _linear_init(key, fan_in, fan_out):
    kw, kb = jax.random.split(key)
    bound = 1.0 / (fan_in ** 0.5)
    w = jax.random.uniform(kw, (fan_in, fan_out), jnp.float32, -bound, bound)
    b = jax.random.uniform(kb, (fan_out,), jnp.float32, -bound, bound)
    return w, b


def _mlp3_init(key, d_in, d_hid, d_out):
    k1, k2, k3 = jax.random.split(key, 3)
    w1, b1 = _linear_init(k1, d_in, d_hid)
    w2, b2 = _linear_init(k2, d_hid, d_hid)
    w3, b3 = _linear_init(k3, d_hid, d_out)
    return {"w1": w1, "b1": b1, "w2": w2, "b2": b2, "w3": w3, "b3": b3}


if __name__ == "__main__":
    key = jax.random.PRNGKey(0)

    # Small, self-consistent shapes.
    B = 2                      # batch
    C5 = 4                     # backbone C5 channels
    Hs = Ws = 8                # C5 spatial size  -> num_pad = 64
    hidden = 32                # detr.transformer.d_model
    num_det_queries = 8        # DETR object queries
    num_hoi_queries = 8        # HOTR HOI queries
    num_actions = 6            # -> action logits = 7
    num_classes = 10           # -> class logits = 11
    dim_fasttext = 300
    L_det = 3                  # DETR decoder layers (>= n=3)
    L_int = 3                  # interaction decoder layers
    tau = 0.05

    ks = jax.random.split(key, 16)
    input_proj_w, input_proj_b = _linear_init(ks[0], C5, hidden)
    sem_w, sem_b = _linear_init(ks[1], dim_fasttext, 256)
    class_w, class_b = _linear_init(ks[2], hidden, num_classes + 1)
    act_w, act_b = _linear_init(ks[3], hidden, num_actions + 1)
    params = {
        "input_proj_w": input_proj_w, "input_proj_b": input_proj_b,
        "sem_w": sem_w, "sem_b": sem_b,
        "class_w": class_w, "class_b": class_b,
        "act_w": act_w, "act_b": act_b,
        "bbox": _mlp3_init(ks[4], hidden, hidden, 4),
        "h_ptr": _mlp3_init(ks[5], hidden, hidden, hidden),
        "o_ptr": _mlp3_init(ks[6], hidden, hidden, hidden),
    }

    # Synthetic inputs (stand-ins for backbone / transformer outputs).
    c5 = jax.random.normal(ks[7], (B, Hs, Ws, C5), jnp.float32)                    # NHWC
    semantic_features = jax.random.normal(ks[8], (B, Hs * Ws, dim_fasttext), jnp.float32)
    hs = jax.random.normal(ks[9], (L_det, B, num_det_queries, hidden), jnp.float32)
    interaction_hs = jax.random.normal(ks[10], (L_int, B, num_hoi_queries, hidden), jnp.float32)

    out = hotr_forward(params, c5, semantic_features, hs, interaction_hs, tau,
                       hoi_aux_loss=True)

    for k in ("pred_logits", "pred_boxes", "pred_hidx", "pred_oidx", "pred_actions"):
        jax.block_until_ready(out[k])
    for aux in out["hoi_aux_outputs"]:
        jax.block_until_ready(aux["pred_hidx"])
    jax.block_until_ready(out["_input_proj"])
    jax.block_until_ready(out["_semantic_features"])

    print("KERNEL_OK")
</pallas_src>

<mosaic_0001>
module attributes {stable_mosaic.version = 11 : i64} {
  func.func @_linear_kernel(%arg0: i32, %arg1: memref<64x4xf32, #tpu.memory_space<vmem>>, %arg2: memref<4x32xf32, #tpu.memory_space<vmem>>, %arg3: memref<1x32xf32, #tpu.memory_space<vmem>>, %arg4: memref<64x32xf32, #tpu.memory_space<vmem>>) attributes {dimension_semantics = [#tpu.dimension_semantics<parallel>], iteration_bounds = array<i64: 2>, scalar_prefetch = 0 : i64, scratch_operands = 0 : i64, tpu.core_type = #tpu.core_type<tc>, window_params = [{transform_indices = @transform_0, window_bounds = array<i64: 64, 4>}, {pipeline_mode = #tpu.pipeline_mode<synchronous>, transform_indices = @transform_1, window_bounds = array<i64: 4, 32>}, {pipeline_mode = #tpu.pipeline_mode<synchronous>, transform_indices = @transform_2, window_bounds = array<i64: 1, 32>}, {transform_indices = @transform_3, window_bounds = array<i64: 64, 32>}]} {
    %c0 = arith.constant 0 : index
    %c0_0 = arith.constant 0 : index
    %0 = vector.load %arg1[%c0, %c0_0] : memref<64x4xf32, #tpu.memory_space<vmem>>, vector<64x4xf32>
    %c0_1 = arith.constant 0 : index
    %c0_2 = arith.constant 0 : index
    %1 = vector.load %arg2[%c0_1, %c0_2] : memref<4x32xf32, #tpu.memory_space<vmem>>, vector<4x32xf32>
    %cst = arith.constant dense<0.000000e+00> : vector<64x32xf32>
    %2 = tpu.matmul %0, %1, %cst {dimension_numbers = #tpu.dot_dimension_numbers<[1], [0], [0], [1], [0, 0, 1, 1], [], []>} : vector<64x4xf32>, vector<4x32xf32>, vector<64x32xf32> -> vector<64x32xf32>
    %c0_3 = arith.constant 0 : index
    %c0_4 = arith.constant 0 : index
    %3 = vector.load %arg3[%c0_3, %c0_4] : memref<1x32xf32, #tpu.memory_space<vmem>>, vector<1x32xf32>
    %4 = vector.broadcast %3 : vector<1x32xf32> to vector<64x32xf32>
    %5 = arith.addf %2, %4 : vector<64x32xf32>
    %c0_5 = arith.constant 0 : index
    %c0_6 = arith.constant 0 : index
    %6 = vector.load %arg4[%c0_5, %c0_6] : memref<64x32xf32, #tpu.memory_space<vmem>>, vector<64x32xf32>
    tpu.vector_store %arg4[%c0_5, %c0_6], %5 {strides = array<i32>} : memref<64x32xf32, #tpu.memory_space<vmem>>, vector<64x32xf32>,
    return
  }
  func.func @transform_0(%arg0: i32) -> (i32, i32) {
    %c0_i32 = arith.constant 0 : i32
    %c0_i32_0 = arith.constant 0 : i32
    return %arg0, %c0_i32 : i32, i32
  }
  func.func @transform_1(%arg0: i32) -> (i32, i32) {
    %c0_i32 = arith.constant 0 : i32
    %c0_i32_0 = arith.constant 0 : i32
    %c0_i32_1 = arith.constant 0 : i32
    return %c0_i32, %c0_i32_0 : i32, i32
  }
  func.func @transform_2(%arg0: i32) -> (i32, i32) {
    %c0_i32 = arith.constant 0 : i32
    %c0_i32_0 = arith.constant 0 : i32
    %c0_i32_1 = arith.constant 0 : i32
    return %c0_i32, %c0_i32_0 : i32, i32
  }
  func.func @transform_3(%arg0: i32) -> (i32, i32) {
    %c0_i32 = arith.constant 0 : i32
    %c0_i32_0 = arith.constant 0 : i32
    return %arg0, %c0_i32 : i32, i32
  }
}

</mosaic_0001>

<bundles_post_ra>
// kernel: tpu_custom_call.1
= control target key start
LH: loop header
LB: loop body
LE: loop exit
PB: predicated region body
PF: predicated region fallthrough
CT: control target
= control target key end

     0   :  { %s382_s12 = smov 0   ;;  %s421_s0 = inlined_call_operand.vmem [shape: f32[128,4], index: 0, kind: input, shape index: {}]   ;;  %s422_s1 = inlined_call_operand.vmem [shape: f32[4,32], index: 1, kind: input, shape index: {}]   ;;  %s423_s2 = inlined_call_operand.vmem [shape: f32[1,32], index: 2, kind: input, shape index: {}]   ;;  %s424_s3 = inlined_call_operand.vmem [shape: f32[128,32], index: 3, kind: output, shape index: {}]  }
   0x1 LB: > { %s322_s13 = sadd.s32 4294967295, %s360_s12   ;;  %p326_p0 = scmp.ge.s32.totalorder %s360_s12, 1  ;;  %s360_s12 = sphi %s382_s12, %s13_s12  }
   0x2   : > { %p138_p1 = scmp.lt.s32.totalorder %s360_s12, 3 }
   0x4   : > { %p139_p2 = pnand %p326_p0, %p138_p1 }
   0x5   : > { %s327_s16 = sshll.u32 (!%p139_p2), %s322_s13, 3 }
   0x6   : > { %142 = sbr.rel (%p139_p2) target bundleno = 159 (0x9f), region = 32  ;;  %p163_p3 = scmp.lt.s32.totalorder (!%p139_p2), %s327_s16, 15 }
   0xb   : > { %v182_v0 = vld [vmem:[%s422_s1] sm:$0xf]  ;;  %vm212_vm0 = vcmask 1043456   ;;  %s426_s16 = smov (!%p163_p3, %s327_s16), 15  ;;  %vm187_vm1 = vcmask 31744   ;;  %vm257_vm2 = vcmask 261120  }
   0xc   : > { %343 = vmatpush.msk.msra.mxu2 %vm212_vm0, %v182_v0  ;;  %344 = vmatpush.msk.msra.mxu3 %vm212_vm0, %v182_v0  ;;  %s328_s17 = sshll.u32 %s426_s16, 3  ;;  %v353_v9 = vld [vmem:[%s423_s2] ss:$0 sm:$0xff] }
   0xd   : > { %331 = vmatpush.msk.msra.mxu0 %vm212_vm0, %v182_v0  ;;  %342 = vmatpush.msk.msra.mxu1 %vm212_vm0, %v182_v0  ;;  %s166_s20 = scalar_lea.vmem %s421_s0, %s328_s17  ;;  %s172_s25 = scalar_lea.vmem %s424_s3, %s328_s17 }
   0xe   : > { %v178_v1 = vld [vmem:[%s166_s20 + $0x20] sm:$0xff]  ;;  %v180_v2 = vld [vmem:[%s166_s20 + $0x30] sm:$0xff]  ;;  %v179_v5 = vld [vmem:[%s166_s20 + $0x28] sm:$0xff] }
   0xf   : > { %v174_v3 = vld [vmem:[%s166_s20] sm:$0xff]  ;;  %336 = vmatmul.msk.f32.vlgmr.msra.gmra.mxu2 %vm187_vm1, %v178_v1  ;;  %338 = vmatmul.msk.f32.vlgmr.msra.gmra.mxu3 %vm187_vm1, %v180_v2  ;;  %v176_v4 = vld [vmem:[%s166_s20 + $0x10] sm:$0xff]  ;;  %v181_v6 = vld [vmem:[%s166_s20 + $0x38] sm:$0xff] }
  0x10   : > { %332 = vmatmul.msk.f32.vlgmr.msra.gmra.mxu0 %vm187_vm1, %v174_v3  ;;  %334 = vmatmul.msk.f32.vlgmr.msra.gmra.mxu1 %vm187_vm1, %v176_v4  ;;  %v175_v7 = vld [vmem:[%s166_s20 + $0x8] sm:$0xff]  ;;  %v177_v8 = vld [vmem:[%s166_s20 + $0x18] sm:$0xff] }
  0x17   : > { %337 = vmatmul.msk.f32.gmra.mxu2 %vm187_vm1, %v179_v5  ;;  %339 = vmatmul.msk.f32.gmra.mxu3 %vm187_vm1, %v181_v6 }
  0x18   : > { %333 = vmatmul.msk.f32.gmra.mxu0 %vm187_vm1, %v175_v7  ;;  %335 = vmatmul.msk.f32.gmra.mxu1 %vm187_vm1, %v177_v8 }
  0x8d   : > { %v233_v10 = vpop.f32.mrf.mxu0  ;;  %v239_v11 = vpop.f32.mrf.mxu1 }
  0x8e   : > { %v234_v12 = vadd.f32 %v353_v9, %v233_v10  ;;  %v240_v13 = vadd.f32 %v353_v9, %v239_v11 }
  0x90   : > { %258 = vst.msk [vmem:[%s172_s25] sm:$0xff] %vm257_vm2, %v234_v12 }
  0x91   : > { %260 = vst.msk [vmem:[%s172_s25 + $0x10] sm:$0xff] %vm257_vm2, %v240_v13 }
  0x92   : > { %v245_v14 = vpop.f32.mrf.mxu2  ;;  %v251_v15 = vpop.f32.mrf.mxu3 }
  0x93   : > { %v246_v16 = vadd.f32 %v353_v9, %v245_v14  ;;  %v252_v17 = vadd.f32 %v353_v9, %v251_v15 }
  0x95   : > { %262 = vst.msk [vmem:[%s172_s25 + $0x20] sm:$0xff] %vm257_vm2, %v246_v16  ;;  %v236_v18 = vpop.f32.mrf.mxu0  ;;  %v242_v19 = vpop.f32.mrf.mxu1 }
  0x96   : > { %264 = vst.msk [vmem:[%s172_s25 + $0x30] sm:$0xff] %vm257_vm2, %v252_v17  ;;  %v237_v20 = vadd.f32 %v353_v9, %v236_v18  ;;  %v243_v21 = vadd.f32 %v353_v9, %v242_v19 }
  0x98   : > { %259 = vst.msk [vmem:[%s172_s25 + $0x8] sm:$0xff] %vm257_vm2, %v237_v20 }
  0x99   : > { %261 = vst.msk [vmem:[%s172_s25 + $0x18] sm:$0xff] %vm257_vm2, %v243_v21 }
  0x9a   : > { %v248_v22 = vpop.f32.mrf.mxu2  ;;  %v254_v23 = vpop.f32.mrf.mxu3 }
  0x9b   : > { %v249_v24 = vadd.f32 %v353_v9, %v248_v22  ;;  %v255_v25 = vadd.f32 %v353_v9, %v254_v23 }
  0x9d   : > { %263 = vst.msk [vmem:[%s172_s25 + $0x28] sm:$0xff] %vm257_vm2, %v249_v24 }
  0x9e   : > { %265 = vst.msk [vmem:[%s172_s25 + $0x38] sm:$0xff] %vm257_vm2, %v255_v25 }
  0x9f PF: > { %s13_s12 = sadd.s32 1, %s360_s12  }
  0xa0   : > { %p10_p4 = scmp.ge.s32.totalorder %s13_s12, 4  }
  0xa2   :  { %12 = sbr.rel (!%p10_p4) target bundleno = 1 (0x1), region = 62 }

</bundles_post_ra>
